<compile_context>
chip_gen: v7x
topology: tpu7x:2x2x1
jax: 0.10.0
libtpu: 0.0.40
codegen_flags: <defaults>
</compile_context>

<pallas_src>
import functools

import jax
import jax.numpy as jnp
from jax.experimental import pallas as pl
from jax.experimental.pallas import tpu as pltpu

LN_EPS = 1e-5  # PyTorch nn.LayerNorm default


def _round_up(a, b):
    return (a + b - 1) // b * b


def _out_layer_kernel(x_ref, gamma_ref, beta_ref, w_ref, b_ref, o_ref, y_ref):
    # x_ref:     (tm, H)   row tile of flattened input
    # gamma_ref: (1, H)    LayerNorm weight
    # beta_ref:  (1, H)    LayerNorm bias
    # w_ref:     (tn, H)   Linear weight tile, PyTorch (O, H) layout (no transpose)
    # b_ref:     (1, tn)   Linear bias tile
    # o_ref:     (tm, tn)  output tile
    # y_ref:     (tm, H)   VMEM scratch: normalized rows, persists across j.

    # LayerNorm only once per row tile (hoisted out of the j loop).
    @pl.when(pl.program_id(1) == 0)
    def _():
        x = x_ref[...].astype(jnp.float32)
        mean = jnp.mean(x, axis=-1, keepdims=True)
        centered = x - mean
        var = jnp.mean(centered * centered, axis=-1, keepdims=True)
        inv_std = jax.lax.rsqrt(var + LN_EPS)
        y = (centered * inv_std) * gamma_ref[...].astype(jnp.float32) \
            + beta_ref[...].astype(jnp.float32)
        y_ref[...] = y.astype(y_ref.dtype)

    # Linear: contract on H against the (tn, H) weight tile -> (tm, tn).
    # Operands stay in the weight/matmul dtype; accumulate in f32.
    out = jax.lax.dot_general(
        y_ref[...], w_ref[...],
        dimension_numbers=(((1,), (1,)), ((), ())),
        preferred_element_type=jnp.float32)
    o_ref[...] = (out + b_ref[...].astype(jnp.float32)).astype(o_ref.dtype)


@functools.partial(
    jax.jit,
    static_argnames=("tm_max", "tn_max", "matmul_dtype", "weight_resident_bytes"))
def out_layer(x, gamma, beta, weight, bias, *, tm_max=2048, tn_max=512,
              matmul_dtype=None, weight_resident_bytes=8 << 20):
    """Fused LayerNorm + Linear.

    x: (..., H); weight: (O, H) (PyTorch nn.Linear layout); bias: (O,).
    """
    H = x.shape[-1]
    O = weight.shape[0]
    lead = x.shape[:-1]
    x2d = x.reshape(-1, H)
    M = x2d.shape[0]

    x_item = jnp.dtype(x.dtype).itemsize
    mm_dtype = jnp.dtype(weight.dtype if matmul_dtype is None else matmul_dtype)
    mm_item = mm_dtype.itemsize

    # Sublane alignment for the narrowest dtype touching a (rows, H) tile.
    min_item = min(x_item, mm_item)
    sub = 8 if min_item >= 4 else (16 if min_item == 2 else 32)

    # Row tile: target ~1 MiB of x per tile (amortize per-grid-step overhead),
    # sublane-aligned, never larger than the padded row count or tm_max.
    tm_target = max(256, (1 << 20) // max(1, H * x_item))
    tm = min(_round_up(M, sub), _round_up(tm_target, sub), _round_up(tm_max, sub))
    tm = max(sub, tm)

    # Output lane tiling: pad O to a multiple of 128 (lane-dense, no vst.msk).
    O_pad = _round_up(O, 128)

    # Resident weight when it fits a small VMEM budget: single j tile with a
    # constant block index -> the weight is DMA'd from HBM once per call
    # instead of M_pad/tm times.
    resident = (O_pad * H * mm_item <= weight_resident_bytes
                and tm * O_pad * x_item <= (8 << 20))
    if resident:
        tn = O_pad
    else:
        tn = max(128, (min(tn_max, O_pad) // 128) * 128)
        if tn >= 256:
            tn -= tn % 256        # 256-aligned N fills the v6e/v7x MXU tiles
        O_pad = _round_up(O_pad, tn)

    # Keep the double-buffered working set well under v7x's 64 MiB VMEM.
    def vmem_est(tm_, tn_):
        return (2 * tm_ * H * x_item        # x tile (double-buffered)
                + 2 * tn_ * H * mm_item     # weight tile
                + 2 * tm_ * tn_ * x_item    # out tile
                + tm_ * H * mm_item         # hoisted-LN scratch
                + (2 * H + tn_) * 4)        # gamma / beta / bias

    budget = 40 << 20
    while vmem_est(tm, tn) > budget and tm > sub:
        tm = max(sub, _round_up(tm // 2, sub))

    M_pad = _round_up(M, tm)
    if M_pad != M:
        x2d = jnp.pad(x2d, ((0, M_pad - M), (0, 0)))

    w_p = weight if O_pad == O else jnp.pad(weight, ((0, O_pad - O), (0, 0)))
    if w_p.dtype != mm_dtype:
        w_p = w_p.astype(mm_dtype)
    b_p = bias if O_pad == O else jnp.pad(bias, (0, O_pad - O))

    gamma2d = gamma.reshape(1, H)
    beta2d = beta.reshape(1, H)
    b2d = b_p.reshape(1, O_pad)

    ni, nj = M_pad // tm, O_pad // tn
    grid = (ni, nj)

    est = vmem_est(tm, tn)
    vmem_limit = int(min(48 << 20, max(16 << 20, 2 * est)))

    # Weight is re-streamed ni times only when it is tiled over j.
    w_stream_factor = 1 if nj == 1 else ni
    cost = pl.CostEstimate(
        flops=2 * M_pad * H * O_pad,
        transcendentals=M_pad,              # one rsqrt per row (LN hoisted)
        bytes_accessed=(M_pad * H * x_item                      # x read
                        + w_stream_factor * O_pad * H * mm_item  # W read(s)
                        + M_pad * O_pad * x_item                # out write
                        + (2 * H + O_pad) * 4),                 # params
    )

    out = pl.pallas_call(
        _out_layer_kernel,
        out_shape=jax.ShapeDtypeStruct((M_pad, O_pad), x.dtype),
        grid_spec=pltpu.PrefetchScalarGridSpec(
            num_scalar_prefetch=0,
            grid=grid,
            in_specs=[
                # x block index is constant over j -> x stays resident across j.
                pl.BlockSpec((tm, H), lambda i, j: (i, 0)),   # x rows
                pl.BlockSpec((1, H), lambda i, j: (0, 0)),    # gamma
                pl.BlockSpec((1, H), lambda i, j: (0, 0)),    # beta
                pl.BlockSpec((tn, H), lambda i, j: (j, 0)),   # W (O,H) tile
                pl.BlockSpec((1, tn), lambda i, j: (0, j)),   # bias tile
            ],
            out_specs=pl.BlockSpec((tm, tn), lambda i, j: (i, j)),
            scratch_shapes=[pltpu.VMEM((tm, H), mm_dtype)],   # hoisted LN rows
        ),
        compiler_params=pltpu.CompilerParams(
            # i (rows) "parallel" -> megacore splits row tiles; j "arbitrary"
            # so the same core walks all output tiles of a row tile in order,
            # keeping the LN scratch and the resident x tile valid.
            dimension_semantics=("parallel", "arbitrary"),
            vmem_limit_bytes=vmem_limit,
        ),
        cost_estimate=cost,
    )(x2d, gamma2d, beta2d, w_p, b2d)

    return out[:M, :O].reshape(*lead, O)


def _reference(x, gamma, beta, weight, bias):
    x = x.astype(jnp.float32)
    mean = jnp.mean(x, axis=-1, keepdims=True)
    var = jnp.mean((x - mean) ** 2, axis=-1, keepdims=True)
    xn = (x - mean) * jax.lax.rsqrt(var + LN_EPS)
    y = xn * gamma + beta
    return y @ weight.T + bias


if __name__ == "__main__":
    input_size = 32
    output_size = 16
    batch, seq = 2, 8

    key = jax.random.PRNGKey(0)
    k_x, k_w = jax.random.split(key)

    x = jax.random.normal(k_x, (batch, seq, input_size), dtype=jnp.float32)

    # Deterministic parameter init matching OutLayer.__init__ / init_params:
    #   LayerNorm: weight=1, bias=0
    #   Linear:    xavier_uniform_ weight, zeros bias
    gamma = jnp.ones((input_size,), dtype=jnp.float32)
    beta = jnp.zeros((input_size,), dtype=jnp.float32)
    bound = (6.0 / (input_size + output_size)) ** 0.5
    weight = jax.random.uniform(
        k_w, (output_size, input_size), dtype=jnp.float32,
        minval=-bound, maxval=bound)
    bias = jnp.zeros((output_size,), dtype=jnp.float32)

    out = jax.block_until_ready(out_layer(x, gamma, beta, weight, bias))
    ref = _reference(x, gamma, beta, weight, bias)
    assert out.shape == (batch, seq, output_size)
    assert jnp.allclose(out, ref, atol=1e-4, rtol=1e-4), "mismatch vs reference"

    # Check 2: row count not divisible by the sublane/tile multiple.
    x_odd = jax.random.normal(key, (3, 5, input_size), dtype=jnp.float32)
    out_odd = jax.block_until_ready(out_layer(x_odd, gamma, beta, weight, bias))
    ref_odd = _reference(x_odd, gamma, beta, weight, bias)
    assert out_odd.shape == (3, 5, output_size)
    assert jnp.allclose(out_odd, ref_odd, atol=1e-4, rtol=1e-4), "odd-shape mismatch"

    # Check 3: multi-tile grid (ni>1, nj>1) to exercise the hoisted-LayerNorm
    # scratch and the streamed-weight path (streaming forced via a zero
    # resident budget and small tile caps).
    in2, out2 = 64, 200
    k1, k2 = jax.random.split(k_w)
    x_big = jax.random.normal(k1, (4, 96, in2), dtype=jnp.float32)
    gamma2 = jnp.ones((in2,), jnp.float32)
    beta2 = jnp.zeros((in2,), jnp.float32)
    bound2 = (6.0 / (in2 + out2)) ** 0.5
    weight2 = jax.random.uniform(k2, (out2, in2), dtype=jnp.float32,
                                 minval=-bound2, maxval=bound2)
    bias2 = jnp.zeros((out2,), jnp.float32)
    out_big = jax.block_until_ready(
        out_layer(x_big, gamma2, beta2, weight2, bias2,
                  tm_max=128, tn_max=128, weight_resident_bytes=0))
    ref_big = _reference(x_big, gamma2, beta2, weight2, bias2)
    assert out_big.shape == (4, 96, out2)
    assert jnp.allclose(out_big, ref_big, atol=1e-4, rtol=1e-4), "tiled mismatch"

    print("KERNEL_OK")
</pallas_src>

<mosaic_0001>
module attributes {stable_mosaic.version = 11 : i64} {
  func.func @_out_layer_kernel(%arg0: i32, %arg1: i32, %arg2: memref<16x32xf32, #tpu.memory_space<vmem>>, %arg3: memref<1x32xf32, #tpu.memory_space<vmem>>, %arg4: memref<1x32xf32, #tpu.memory_space<vmem>>, %arg5: memref<128x32xf32, #tpu.memory_space<vmem>>, %arg6: memref<1x128xf32, #tpu.memory_space<vmem>>, %arg7: memref<16x128xf32, #tpu.memory_space<vmem>>, %arg8: memref<16x32xf32, #tpu.memory_space<vmem>>) attributes {dimension_semantics = [#tpu.dimension_semantics<parallel>, #tpu.dimension_semantics<arbitrary>], iteration_bounds = array<i64: 1, 1>, scalar_prefetch = 0 : i64, scratch_operands = 1 : i64, tpu.core_type = #tpu.core_type<tc>, window_params = [{transform_indices = @transform_0, window_bounds = array<i64: 16, 32>}, {pipeline_mode = #tpu.pipeline_mode<synchronous>, transform_indices = @transform_1, window_bounds = array<i64: 1, 32>}, {pipeline_mode = #tpu.pipeline_mode<synchronous>, transform_indices = @transform_2, window_bounds = array<i64: 1, 32>}, {transform_indices = @transform_3, window_bounds = array<i64: 128, 32>}, {transform_indices = @transform_4, window_bounds = array<i64: 1, 128>}, {transform_indices = @transform_5, window_bounds = array<i64: 16, 128>}]} {
    %c0_i32 = arith.constant 0 : i32
    %0 = arith.cmpi eq, %arg1, %c0_i32 : i32
    %1 = arith.extui %0 : i1 to i32
    %c0_i32_0 = arith.constant 0 : i32
    %2 = arith.cmpi ne, %1, %c0_i32_0 : i32
    scf.if %2 {
      %c0_8 = arith.constant 0 : index
      %c0_9 = arith.constant 0 : index
      %10 = vector.load %arg2[%c0_8, %c0_9] : memref<16x32xf32, #tpu.memory_space<vmem>>, vector<16x32xf32>
      %cst_10 = arith.constant dense<0.000000e+00> : vector<16xf32>
      %11 = vector.multi_reduction <add>, %10, %cst_10 [1] : vector<16x32xf32> to vector<16xf32>
      %12 = vector.shape_cast %11 : vector<16xf32> to vector<16x1xf32>
      %cst_11 = arith.constant 3.200000e+01 : f32
      %13 = vector.broadcast %cst_11 : f32 to vector<16x1xf32>
      %14 = arith.divf %12, %13 : vector<16x1xf32>
      %15 = vector.broadcast %14 : vector<16x1xf32> to vector<16x32xf32>
      %16 = arith.subf %10, %15 : vector<16x32xf32>
      %17 = arith.mulf %16, %16 : vector<16x32xf32>
      %cst_12 = arith.constant dense<0.000000e+00> : vector<16xf32>
      %18 = vector.multi_reduction <add>, %17, %cst_12 [1] : vector<16x32xf32> to vector<16xf32>
      %19 = vector.shape_cast %18 : vector<16xf32> to vector<16x1xf32>
      %cst_13 = arith.constant 3.200000e+01 : f32
      %20 = vector.broadcast %cst_13 : f32 to vector<16x1xf32>
      %21 = arith.divf %19, %20 : vector<16x1xf32>
      %cst_14 = arith.constant 9.99999974E-6 : f32
      %22 = vector.broadcast %cst_14 : f32 to vector<16x1xf32>
      %23 = arith.addf %21, %22 : vector<16x1xf32>
      %24 = math.rsqrt %23 : vector<16x1xf32>
      %25 = vector.broadcast %24 : vector<16x1xf32> to vector<16x32xf32>
      %26 = arith.mulf %16, %25 : vector<16x32xf32>
      %c0_15 = arith.constant 0 : index
      %c0_16 = arith.constant 0 : index
      %27 = vector.load %arg3[%c0_15, %c0_16] : memref<1x32xf32, #tpu.memory_space<vmem>>, vector<1x32xf32>
      %28 = vector.broadcast %27 : vector<1x32xf32> to vector<16x32xf32>
      %29 = arith.mulf %26, %28 : vector<16x32xf32>
      %c0_17 = arith.constant 0 : index
      %c0_18 = arith.constant 0 : index
      %30 = vector.load %arg4[%c0_17, %c0_18] : memref<1x32xf32, #tpu.memory_space<vmem>>, vector<1x32xf32>
      %31 = vector.broadcast %30 : vector<1x32xf32> to vector<16x32xf32>
      %32 = arith.addf %29, %31 : vector<16x32xf32>
      %c0_19 = arith.constant 0 : index
      %c0_20 = arith.constant 0 : index
      %33 = vector.load %arg8[%c0_19, %c0_20] : memref<16x32xf32, #tpu.memory_space<vmem>>, vector<16x32xf32>
      tpu.vector_store %arg8[%c0_19, %c0_20], %32 {strides = array<i32>} : memref<16x32xf32, #tpu.memory_space<vmem>>, vector<16x32xf32>,
    } else {
    }
    %c0 = arith.constant 0 : index
    %c0_1 = arith.constant 0 : index
    %3 = vector.load %arg8[%c0, %c0_1] : memref<16x32xf32, #tpu.memory_space<vmem>>, vector<16x32xf32>
    %c0_2 = arith.constant 0 : index
    %c0_3 = arith.constant 0 : index
    %4 = vector.load %arg5[%c0_2, %c0_3] : memref<128x32xf32, #tpu.memory_space<vmem>>, vector<128x32xf32>
    %cst = arith.constant dense<0.000000e+00> : vector<16x128xf32>
    %5 = tpu.matmul %3, %4, %cst {dimension_numbers = #tpu.dot_dimension_numbers<[1], [1], [0], [0], [0, 0, 1, 0], [], []>} : vector<16x32xf32>, vector<128x32xf32>, vector<16x128xf32> -> vector<16x128xf32>
    %c0_4 = arith.constant 0 : index
    %c0_5 = arith.constant 0 : index
    %6 = vector.load %arg6[%c0_4, %c0_5] : memref<1x128xf32, #tpu.memory_space<vmem>>, vector<1x128xf32>
    %7 = vector.broadcast %6 : vector<1x128xf32> to vector<16x128xf32>
    %8 = arith.addf %5, %7 : vector<16x128xf32>
    %c0_6 = arith.constant 0 : index
    %c0_7 = arith.constant 0 : index
    %9 = vector.load %arg7[%c0_6, %c0_7] : memref<16x128xf32, #tpu.memory_space<vmem>>, vector<16x128xf32>
    tpu.vector_store %arg7[%c0_6, %c0_7], %8 {strides = array<i32>} : memref<16x128xf32, #tpu.memory_space<vmem>>, vector<16x128xf32>,
    return
  }
  func.func @transform_0(%arg0: i32, %arg1: i32) -> (i32, i32) {
    %c0_i32 = arith.constant 0 : i32
    %c0_i32_0 = arith.constant 0 : i32
    return %arg0, %c0_i32 : i32, i32
  }
  func.func @transform_1(%arg0: i32, %arg1: i32) -> (i32, i32) {
    %c0_i32 = arith.constant 0 : i32
    %c0_i32_0 = arith.constant 0 : i32
    %c0_i32_1 = arith.constant 0 : i32
    return %c0_i32, %c0_i32_0 : i32, i32
  }
  func.func @transform_2(%arg0: i32, %arg1: i32) -> (i32, i32) {
    %c0_i32 = arith.constant 0 : i32
    %c0_i32_0 = arith.constant 0 : i32
    %c0_i32_1 = arith.constant 0 : i32
    return %c0_i32, %c0_i32_0 : i32, i32
  }
  func.func @transform_3(%arg0: i32, %arg1: i32) -> (i32, i32) {
    %c0_i32 = arith.constant 0 : i32
    %c0_i32_0 = arith.constant 0 : i32
    return %arg1, %c0_i32 : i32, i32
  }
  func.func @transform_4(%arg0: i32, %arg1: i32) -> (i32, i32) {
    %c0_i32 = arith.constant 0 : i32
    %c0_i32_0 = arith.constant 0 : i32
    return %c0_i32, %arg1 : i32, i32
  }
  func.func @transform_5(%arg0: i32, %arg1: i32) -> (i32, i32) {
    %c0_i32 = arith.constant 0 : i32
    return %arg0, %arg1 : i32, i32
  }
}

</mosaic_0001>

<bundles_post_ra>
// kernel: out_layer.1
= control target key start
LH: loop header
LB: loop body
LE: loop exit
PB: predicated region body
PF: predicated region fallthrough
CT: control target
= control target key end

     0   :  { %vm26_vm0 = vcmask 261120   ;;  %s506_s0 = inlined_call_operand.vmem [shape: f32[16,32], index: 0, kind: input, shape index: {}]   ;;  %s507_s3 = inlined_call_operand.vmem [shape: f32[128,32], index: 3, kind: input, shape index: {}]   ;;  %s508_s1 = inlined_call_operand.vmem [shape: f32[1,32], index: 1, kind: input, shape index: {}]   ;;  %s509_s2 = inlined_call_operand.vmem [shape: f32[1,32], index: 2, kind: input, shape index: {}]   ;;  %s510_s4 = inlined_call_operand.vmem [shape: f32[1,128], index: 4, kind: input, shape index: {}]   ;;  %s511_s5 = inlined_call_operand.vmem [shape: f32[16,128], index: 5, kind: output, shape index: {}]  }
   0x1   :  { %v24_v0 = vld [vmem:[%s506_s0] sm:$0xff]  ;;  %v25_v1 = vld [vmem:[%s506_s0 + $0x8] sm:$0xff]  ;;  %vm401_vm1 = vmpackc.low %vm26_vm0, %vm26_vm0 }
   0x2   :  { %v27_v2 = vsel %vm26_vm0, %v24_v0, 0.0  ;;  %v30_v3 = vsel %vm26_vm0, %v25_v1, 0.0  ;;  %v76_v5 = vld [vmem:[%s507_s3] sm:$0xff]  ;;  %v77_v6 = vld [vmem:[%s507_s3 + $0x8] sm:$0xff]  ;;  %v78_v7 = vld [vmem:[%s507_s3 + $0x10] sm:$0xff] }
   0x3   :  { %28 = vadd.xlane.f32.xlu0 %v27_v2  ;;  %v309_v8 = vpack.c.bf16 %v77_v6, %v76_v5  ;;  %v79_v9 = vld [vmem:[%s507_s3 + $0x18] sm:$0xff]  ;;  %v80_v11 = vld [vmem:[%s507_s3 + $0x20] sm:$0xff]  ;;  %v81_v12 = vld [vmem:[%s507_s3 + $0x28] sm:$0xff] }
   0x4   :  { %v315_v10 = vpack.c.bf16 %v79_v9, %v78_v7  ;;  %v321_v13 = vpack.c.bf16 %v81_v12, %v80_v11  ;;  %v82_v14 = vld [vmem:[%s507_s3 + $0x30] sm:$0xff]  ;;  %v83_v15 = vld [vmem:[%s507_s3 + $0x38] sm:$0xff]  ;;  %v84_v27 = vld [vmem:[%s507_s3 + $0x40] sm:$0xff] }
   0x5   :  { %311 = vmatprep.subr.msk.bf16.mxu0 %vm401_vm1, %v309_v8  ;;  %v327_v16 = vpack.c.bf16 %v83_v15, %v82_v14  ;;  %v85_v28 = vld [vmem:[%s507_s3 + $0x48] sm:$0xff]  ;;  %v86_v30 = vld [vmem:[%s507_s3 + $0x50] sm:$0xff]  ;;  %v87_v31 = vld [vmem:[%s507_s3 + $0x58] sm:$0xff] }
   0x6   :  { %314 = vmatpush3.bf16.xpose.msk.msra.mxu0 %vm401_vm1, %v309_v8  ;;  %v333_v29 = vpack.c.bf16 %v85_v28, %v84_v27  ;;  %v339_v32 = vpack.c.bf16 %v87_v31, %v86_v30  ;;  %v88_v33 = vld [vmem:[%s507_s3 + $0x60] sm:$0xff]  ;;  %v89_v34 = vld [vmem:[%s507_s3 + $0x68] sm:$0xff]  ;;  %v90_v36 = vld [vmem:[%s507_s3 + $0x70] sm:$0xff] }
   0x7   :  { %31 = vadd.xlane.f32.xlu0 %v30_v3  ;;  %317 = vmatprep.subr.msk.bf16.mxu0 %vm401_vm1, %v315_v10  ;;  %v345_v35 = vpack.c.bf16 %v89_v34, %v88_v33  ;;  %v91_v37 = vld [vmem:[%s507_s3 + $0x78] sm:$0xff]  ;;  %v235_v46 = vld [vmem:[%s508_s1] ss:$0 sm:$0xff] }
   0x8   :  { %v351_v38 = vpack.c.bf16 %v91_v37, %v90_v36  ;;  %v236_v48 = vld [vmem:[%s509_s2] ss:$0 sm:$0xff] }
   0x9   :  { %v237_v57 = vld [vmem:[%s510_s4] ss:$0 sm:$0xff] }
   0xe   :  { %320 = vmatpush3.bf16.xpose.msk.msra.mxu0 %vm401_vm1, %v315_v10 }
   0xf   :  { %323 = vmatprep.subr.msk.bf16.mxu0 %vm401_vm1, %v321_v13 }
  0x16   :  { %326 = vmatpush3.bf16.xpose.msk.msra.mxu0 %vm401_vm1, %v321_v13 }
  0x17   :  { %329 = vmatprep.subr.msk.bf16.mxu0 %vm401_vm1, %v327_v16 }
  0x1e   :  { %332 = vmatpush3.bf16.xpose.msk.msra.mxu0 %vm401_vm1, %v327_v16 }
  0x1f   :  { %335 = vmatprep.subr.msk.bf16.mxu0 %vm401_vm1, %v333_v29 }
  0x26   :  { %338 = vmatpush3.bf16.xpose.msk.msra.mxu0 %vm401_vm1, %v333_v29 }
  0x27   :  { %341 = vmatprep.subr.msk.bf16.mxu0 %vm401_vm1, %v339_v32 }
  0x2e   :  { %344 = vmatpush3.bf16.xpose.msk.msra.mxu0 %vm401_vm1, %v339_v32 }
  0x2f   :  { %347 = vmatprep.subr.msk.bf16.mxu0 %vm401_vm1, %v345_v35 }
  0x36   :  { %350 = vmatpush3.bf16.xpose.msk.msra.mxu0 %vm401_vm1, %v345_v35 }
  0x37   :  { %353 = vmatprep.subr.msk.bf16.mxu0 %vm401_vm1, %v351_v38 }
  0x3e   :  { %356 = vmatpush3.bf16.xpose.msk.msra.mxu0 %vm401_vm1, %v351_v38 }
  0x90   :  { %v29_v17 = vpop.xlane.xlu0 %28 }
  0x91   :  { %v34_v18 = vmul.f32 0.03125, %v29_v17 }
  0x93   :  { %v36_v19 = vsub.f32 %v24_v0, %v34_v18 }
  0x94   :  { %v32_v20 = vpop.xlane.xlu0 %31 }
  0x95   :  { %v35_v21 = vmul.f32 0.03125, %v32_v20  ;;  %v38_v22 = vmul.f32 %v36_v19, %v36_v19 }
  0x97   :  { %v37_v23 = vsub.f32 %v25_v1, %v35_v21  ;;  %v40_v24 = vsel %vm26_vm0, %v38_v22, 0.0 }
  0x98   :  { %41 = vadd.xlane.f32.xlu1 %v40_v24 }
  0x99   :  { %v39_v25 = vmul.f32 %v37_v23, %v37_v23 }
  0x9b   :  { %v43_v26 = vsel %vm26_vm0, %v39_v25, 0.0 }
  0x9c   :  { %44 = vadd.xlane.f32.xlu1 %v43_v26 }
 0x125   :  { %v42_v39 = vpop.xlane.xlu1 %41 }
 0x126   :  { %v46_v40 = vmul.f32 0.03125, %v42_v39 }
 0x128   :  { %v48_v41 = vadd.f32 1e-05, %v46_v40 }
 0x129   :  { %v45_v42 = vpop.xlane.xlu1 %44 }
 0x12a   :  { %357 = vrsqrt.f32 %v48_v41  ;;  %v47_v43 = vmul.f32 0.03125, %v45_v42 }
 0x12c   :  { %v49_v44 = vadd.f32 1e-05, %v47_v43 }
 0x12e   :  { %359 = vrsqrt.f32 %v49_v44 }
 0x134   :  { %v358_v45 = vpop.eup %357 }
 0x135   :  { %v52_v47 = vmul.f32 %v358_v45, %v36_v19 }
 0x137   :  { %v61_v49 = vmul.f32 %v235_v46, %v52_v47 }
 0x138   :  { %v360_v50 = vpop.eup %359 }
 0x139   :  { %v70_v51 = vadd.f32 %v236_v48, %v61_v49  ;;  %v53_v52 = vmul.f32 %v360_v50, %v37_v23 }
 0x13b   :  { %72 = vst.msk [vmem:[#allocation2] sm:$0xff] %vm26_vm0, %v70_v51  ;;  %v62_v53 = vmul.f32 %v235_v46, %v53_v52 }
 0x13d   :  { %v71_v54 = vadd.f32 %v236_v48, %v62_v53 }
 0x13f   :  { %73 = vst.msk [vmem:[#allocation2 + $0x8] sm:$0xff] %vm26_vm0, %v71_v54 }
 0x142   :  { %v74_v55 = vld [vmem:[#allocation2] sm:$0xff] }
 0x143   :  { %306 = vmatprep.mubr.msk.f32.mxu0 %vm26_vm0, %v74_v55 }
 0x146   :  { %v75_v56 = vld [vmem:[#allocation2 + $0x8] sm:$0xff] }
 0x147   :  { %307 = vmatmul.mubr.msk.f32.vlgmr.msra.gmra.mrb[0].mxu0 %vm26_vm0, %v75_v56 }
 0x21a   :  { %v308_v58 = vpop.f32.mrb[0].mxu0 }
 0x21b   :  { %v226_v59 = vadd.f32 %v308_v58, %v237_v57  ;;  %v220_v60 = vpop.f32.mrb[1].mxu0 }
 0x21c   :  { %v221_v61 = vadd.f32 %v237_v57, %v220_v60 }
 0x21d   :  { %230 = vst [vmem:[%s511_s5 + $0x8] sm:$0xff] %v226_v59 }
 0x21e   :  { %229 = vst [vmem:[%s511_s5] sm:$0xff] %v221_v61 }

</bundles_post_ra>
